<compile_context>
chip_gen: v6e
topology: v6e:2x2x1
jax: 0.10.0
libtpu: 0.0.40
codegen_flags: <defaults>
</compile_context>

<pallas_src>
import functools
import math

import jax
import jax.numpy as jnp
from jax.experimental import pallas as pl
from jax.experimental.pallas import tpu as pltpu


def _round_up(x, m):
    return ((x + m - 1) // m) * m


def _vmem_capacity_bytes():
    """Per-TensorCore VMEM capacity; conservative fallback if the query fails."""
    try:
        return int(pltpu.get_tpu_info().vmem_capacity_bytes)
    except Exception:
        return 64 << 20  # v7x per-TC size: safe lower bound everywhere


def _bspec(shape, index_map, *, single_buffer=False):
    """BlockSpec helper; single_buffer=True marks an index-invariant operand."""
    if single_buffer:
        try:
            return pl.BlockSpec(shape, index_map, pipeline_mode=pl.Buffered(1))
        except TypeError:  # older jax without pipeline_mode kwarg
            pass
    return pl.BlockSpec(shape, index_map)


def _pick_tm(M, tm_cap):
    """Largest 8-aligned row tile <= tm_cap with <=10% padding waste.

    When there is enough work, keep the grid >= 2 steps so both v7x
    TensorCores get a share (no-op on 1-TC chips)."""
    M = max(int(M), 1)
    M8 = _round_up(M, 8)
    cap = min(tm_cap, M8)
    if M8 >= 16:
        cap = min(cap, _round_up((M8 + 1) // 2, 8))
    cap = max(cap, 8)
    best = 8
    waste_budget = max(int(0.10 * M), 7)
    t = 8
    while t <= cap:
        if (_round_up(M, t) - M) <= waste_budget:
            best = t
        t += 8
    return best


def _gelu_f32(h, approximate):
    if approximate:
        # tanh-approx GELU: tanh runs on the EUP (separate VLIW slot), off the VALU.
        return jax.nn.gelu(h, approximate=True)
    # Exact erf GELU in f32 (matches torch.nn.GELU() default numerics).
    return 0.5 * h * (1.0 + jax.lax.erf(h * (1.0 / math.sqrt(2.0))))


def _mlp_kernel_resident(x_ref, w1_ref, b1_ref, w2_ref, b2_ref, o_ref, *, approximate):
    # x_ref:  (tm, C) row tile (caller dtype)
    # w1_ref: (C, H), w2_ref: (H, O_pad)  -- resident, single-buffered
    # b1_ref: (1, H) f32, b2_ref: (1, O_pad) f32
    h = jnp.dot(x_ref[...], w1_ref[...], preferred_element_type=jnp.float32)
    h = h + b1_ref[...]                      # bias add in f32
    h = _gelu_f32(h, approximate)            # GELU in f32
    # drop1: p = 0.0 -> identity
    h = h.astype(w2_ref.dtype)               # bf16 MXU path when weights are bf16
    y = jnp.dot(h, w2_ref[...], preferred_element_type=jnp.float32)
    # drop2: p = 0.0 -> identity
    o_ref[...] = (y + b2_ref[...]).astype(o_ref.dtype)


def _mlp_kernel_htiled(x_ref, w1_ref, b1_ref, w2_ref, b2_ref, o_ref, acc_ref, *, approximate):
    # Grid = (M tiles, H tiles); H (reduction for fc2) is the last, "arbitrary" axis.
    # x_ref: (tm, C); w1_ref: (C, tH); b1_ref: (1, tH); w2_ref: (tH, O_pad);
    # b2_ref: (1, O_pad); acc_ref: (tm, O_pad) f32 scratch.
    j = pl.program_id(1)

    @pl.when(j == 0)
    def _():
        acc_ref[...] = jnp.zeros_like(acc_ref)

    h = jnp.dot(x_ref[...], w1_ref[...], preferred_element_type=jnp.float32)
    h = h + b1_ref[...]
    h = _gelu_f32(h, approximate)
    h = h.astype(w2_ref.dtype)
    acc_ref[...] += jnp.dot(h, w2_ref[...], preferred_element_type=jnp.float32)

    @pl.when(j == pl.num_programs(1) - 1)
    def _():
        o_ref[...] = (acc_ref[...] + b2_ref[...]).astype(o_ref.dtype)


def mlp_pallas(x, w1, b1, w2, b2, *, tm=None, approximate_gelu=False,
               force_h_tiling=False):
    """x: (B, N, C); w1: (C, H); b1: (H,); w2: (H, O); b2: (O,).

    Weights are (in_features, out_features), i.e. the transpose of PyTorch's
    nn.Linear (out, in) layout, so the kernel computes y = x @ W + b.
    Returns (B, N, O).  bf16 inputs/weights are the intended fast path
    (bf16 MXU with f32 accumulation), especially on v5e.
    """
    B, N, C = x.shape
    H = w1.shape[1]
    O = w2.shape[1]
    M = B * N
    in_dtype = x.dtype
    itemsize = jnp.dtype(in_dtype).itemsize
    w_itemsize = jnp.dtype(w1.dtype).itemsize

    vmem_cap = _vmem_capacity_bytes()

    # Chip-aware row-tile cap: 512 on 128 MiB VMEM parts (v5e/v6e), 256 on v7x.
    tm_cap = 512 if vmem_cap >= (96 << 20) else 256
    if tm is None:
        tm = _pick_tm(M, tm_cap)
    else:
        tm = max(8, _round_up(min(int(tm), _round_up(M, 8)), 8))
    M_pad = _round_up(M, tm)

    # Lane-dense output: pad out_features up to a multiple of 128 (full-width vst).
    O_pad = _round_up(O, 128)

    x2d = x.reshape(M, C)
    if M_pad != M:
        x2d = jnp.pad(x2d, ((0, M_pad - M), (0, 0)))

    # Biases pre-cast to f32 in the wrapper (no per-iteration casts in-kernel).
    b1r = b1.reshape(1, H).astype(jnp.float32)
    w2p = w2 if O_pad == O else jnp.pad(w2, ((0, 0), (0, O_pad - O)))
    b2r = b2.reshape(1, O)
    if O_pad != O:
        b2r = jnp.pad(b2r, ((0, 0), (0, O_pad - O)))
    b2r = b2r.astype(jnp.float32)

    # Resident-path VMEM estimate: x/out double-buffered, weights/biases
    # single-buffered (Buffered(1)), f32 hidden + activation copy/temps.
    resident_need = (
        2 * tm * C * itemsize
        + 2 * tm * O_pad * itemsize
        + (C * H + H * O_pad) * w_itemsize
        + (H + O_pad) * 4
        + tm * H * 4
        + tm * H * max(itemsize, 2)
    )

    use_h_tiling = force_h_tiling or (resident_need > 0.75 * vmem_cap)

    if not use_h_tiling:
        vmem_limit = int(min(max(resident_need * 1.25 + (2 << 20), 16 << 20),
                             0.85 * vmem_cap))
        cost = pl.CostEstimate(
            flops=2 * M_pad * (C * H + H * O_pad),
            transcendentals=M_pad * H,  # erf/tanh in GELU
            bytes_accessed=(M_pad * C * itemsize
                            + (C * H + H * O_pad) * w_itemsize
                            + (H + O_pad) * 4
                            + M_pad * O_pad * itemsize),
        )
        kernel = functools.partial(_mlp_kernel_resident, approximate=approximate_gelu)
        out2d = pl.pallas_call(
            kernel,
            out_shape=jax.ShapeDtypeStruct((M_pad, O_pad), in_dtype),
            grid_spec=pltpu.PrefetchScalarGridSpec(
                num_scalar_prefetch=0,
                grid=(M_pad // tm,),
                in_specs=[
                    _bspec((tm, C), lambda i: (i, 0)),                      # x (streamed)
                    _bspec((C, H), lambda i: (0, 0), single_buffer=True),   # w1 resident
                    _bspec((1, H), lambda i: (0, 0), single_buffer=True),   # b1 resident
                    _bspec((H, O_pad), lambda i: (0, 0), single_buffer=True),  # w2 resident
                    _bspec((1, O_pad), lambda i: (0, 0), single_buffer=True),  # b2 resident
                ],
                out_specs=pl.BlockSpec((tm, O_pad), lambda i: (i, 0)),
            ),
            compiler_params=pltpu.CompilerParams(
                dimension_semantics=("parallel",),          # megacore sharding on v7x
                vmem_limit_bytes=vmem_limit,
            ),
            cost_estimate=cost,
        )(x2d, w1, b1r, w2p, b2r)
    else:
        # H-tiled fallback: stream weight slabs, f32 accumulator in VMEM scratch.
        budget = 0.75 * vmem_cap

        def _need(th):
            return (2 * tm * C * itemsize
                    + 2 * tm * O_pad * itemsize
                    + 2 * C * th * w_itemsize
                    + 2 * th * O_pad * w_itemsize
                    + 2 * th * 4 + O_pad * 4
                    + tm * O_pad * 4
                    + tm * th * 4 + tm * th * max(itemsize, 2))

        tH = 128
        for cand in (2048, 1024, 512, 256, 128):
            if cand > _round_up(H, 128):
                continue
            if _need(cand) <= budget:
                tH = cand
                break
        need = _need(tH)
        H_pad = _round_up(H, tH)

        # Zero-pad the hidden dim: padded columns of w1/b1 produce GELU(0)=0 and
        # hit zero rows of w2, so they contribute nothing.
        w1p = w1 if H_pad == H else jnp.pad(w1, ((0, 0), (0, H_pad - H)))
        b1p = b1r if H_pad == H else jnp.pad(b1r, ((0, 0), (0, H_pad - H)))
        w2pp = w2p if H_pad == H else jnp.pad(w2p, ((0, H_pad - H), (0, 0)))

        vmem_limit = int(min(max(need * 1.2 + (2 << 20), 16 << 20), 0.9 * vmem_cap))
        n_mtiles = M_pad // tm
        cost = pl.CostEstimate(
            flops=2 * M_pad * (C * H_pad + H_pad * O_pad),
            transcendentals=M_pad * H_pad,
            bytes_accessed=(M_pad * C * itemsize
                            + n_mtiles * (C * H_pad + H_pad * O_pad) * w_itemsize
                            + (H_pad + O_pad) * 4
                            + M_pad * O_pad * itemsize),
        )
        kernel = functools.partial(_mlp_kernel_htiled, approximate=approximate_gelu)
        out2d = pl.pallas_call(
            kernel,
            out_shape=jax.ShapeDtypeStruct((M_pad, O_pad), in_dtype),
            grid_spec=pltpu.PrefetchScalarGridSpec(
                num_scalar_prefetch=0,
                grid=(n_mtiles, H_pad // tH),
                in_specs=[
                    _bspec((tm, C), lambda i, j: (i, 0)),        # x (constant over j)
                    _bspec((C, tH), lambda i, j: (0, j)),        # w1 slab (streamed)
                    _bspec((1, tH), lambda i, j: (0, j)),        # b1 slab
                    _bspec((tH, O_pad), lambda i, j: (j, 0)),    # w2 slab (streamed)
                    _bspec((1, O_pad), lambda i, j: (0, 0), single_buffer=True),  # b2
                ],
                out_specs=pl.BlockSpec((tm, O_pad), lambda i, j: (i, 0)),
                scratch_shapes=[pltpu.VMEM((tm, O_pad), jnp.float32)],
            ),
            compiler_params=pltpu.CompilerParams(
                dimension_semantics=("parallel", "arbitrary"),   # reduction axis last
                vmem_limit_bytes=vmem_limit,
            ),
            cost_estimate=cost,
        )(x2d, w1p, b1p, w2pp, b2r)

    return out2d[:M, :O].reshape(B, N, O)


def mlp_reference(x, w1, b1, w2, b2):
    h = jnp.einsum("bnc,ch->bnh", x.astype(jnp.float32), w1.astype(jnp.float32)) \
        + b1.astype(jnp.float32)
    h = 0.5 * h * (1.0 + jax.lax.erf(h / jnp.sqrt(2.0)))
    return jnp.einsum("bnh,ho->bno", h, w2.astype(jnp.float32)) + b2.astype(jnp.float32)


if __name__ == "__main__":
    # Small ViT-ish shapes: batch=2, seq=8, in=32, hidden=64, out=32
    B, N = 2, 8
    in_features, hidden_features, out_features = 32, 64, 32

    key = jax.random.PRNGKey(0)
    kx, k1, kb1, k2, kb2 = jax.random.split(key, 5)

    x = jax.random.normal(kx, (B, N, in_features), dtype=jnp.float32)

    # Deterministic init mimicking nn.Linear's uniform(-1/sqrt(fan_in), +) bounds.
    lim1 = 1.0 / math.sqrt(in_features)
    w1 = jax.random.uniform(k1, (in_features, hidden_features),
                            minval=-lim1, maxval=lim1, dtype=jnp.float32)
    b1 = jax.random.uniform(kb1, (hidden_features,),
                            minval=-lim1, maxval=lim1, dtype=jnp.float32)

    lim2 = 1.0 / math.sqrt(hidden_features)
    w2 = jax.random.uniform(k2, (hidden_features, out_features),
                            minval=-lim2, maxval=lim2, dtype=jnp.float32)
    b2 = jax.random.uniform(kb2, (out_features,),
                            minval=-lim2, maxval=lim2, dtype=jnp.float32)

    ref = mlp_reference(x, w1, b1, w2, b2)

    # f32 resident path: must match the reference tightly (MXU f32 passes).
    out = jax.block_until_ready(mlp_pallas(x, w1, b1, w2, b2))
    assert out.shape == (B, N, out_features)
    assert jnp.allclose(out, ref, atol=1e-4, rtol=1e-4), "f32 resident mismatch"

    # f32 H-tiled fallback path (forced): exercises the accumulator kernel.
    out_ht = jax.block_until_ready(
        mlp_pallas(x, w1, b1, w2, b2, force_h_tiling=True))
    assert jnp.allclose(out_ht, ref, atol=1e-4, rtol=1e-4), "f32 H-tiled mismatch"

    # bf16 path (native MXU dtype): loose tolerance vs the f32 reference.
    out_bf16 = jax.block_until_ready(
        mlp_pallas(x.astype(jnp.bfloat16), w1.astype(jnp.bfloat16),
                   b1.astype(jnp.bfloat16), w2.astype(jnp.bfloat16),
                   b2.astype(jnp.bfloat16)))
    assert jnp.allclose(out_bf16.astype(jnp.float32), ref, atol=5e-2, rtol=5e-2), \
        "bf16 mismatch vs reference"

    print("KERNEL_OK")
</pallas_src>

<mosaic_0001>
module attributes {stable_mosaic.version = 11 : i64} {
  func.func @_mlp_kernel_resident(%arg0: i32, %arg1: memref<8x32xf32, #tpu.memory_space<vmem>>, %arg2: memref<32x64xf32, #tpu.memory_space<vmem>>, %arg3: memref<1x64xf32, #tpu.memory_space<vmem>>, %arg4: memref<64x128xf32, #tpu.memory_space<vmem>>, %arg5: memref<1x128xf32, #tpu.memory_space<vmem>>, %arg6: memref<8x128xf32, #tpu.memory_space<vmem>>) attributes {dimension_semantics = [#tpu.dimension_semantics<parallel>], iteration_bounds = array<i64: 2>, scalar_prefetch = 0 : i64, scratch_operands = 0 : i64, tpu.core_type = #tpu.core_type<tc>, window_params = [{transform_indices = @transform_0, window_bounds = array<i64: 8, 32>}, {pipeline_mode = #tpu.pipeline_mode<synchronous>, transform_indices = @transform_1, window_bounds = array<i64: 32, 64>}, {pipeline_mode = #tpu.pipeline_mode<synchronous>, transform_indices = @transform_2, window_bounds = array<i64: 1, 64>}, {pipeline_mode = #tpu.pipeline_mode<synchronous>, transform_indices = @transform_3, window_bounds = array<i64: 64, 128>}, {pipeline_mode = #tpu.pipeline_mode<synchronous>, transform_indices = @transform_4, window_bounds = array<i64: 1, 128>}, {transform_indices = @transform_5, window_bounds = array<i64: 8, 128>}]} {
    %c0 = arith.constant 0 : index
    %c0_0 = arith.constant 0 : index
    %0 = vector.load %arg1[%c0, %c0_0] : memref<8x32xf32, #tpu.memory_space<vmem>>, vector<8x32xf32>
    %c0_1 = arith.constant 0 : index
    %c0_2 = arith.constant 0 : index
    %1 = vector.load %arg2[%c0_1, %c0_2] : memref<32x64xf32, #tpu.memory_space<vmem>>, vector<32x64xf32>
    %cst = arith.constant dense<0.000000e+00> : vector<8x64xf32>
    %2 = tpu.matmul %0, %1, %cst {dimension_numbers = #tpu.dot_dimension_numbers<[1], [0], [0], [1], [0, 0, 1, 1], [], []>} : vector<8x32xf32>, vector<32x64xf32>, vector<8x64xf32> -> vector<8x64xf32>
    %c0_3 = arith.constant 0 : index
    %c0_4 = arith.constant 0 : index
    %3 = vector.load %arg3[%c0_3, %c0_4] : memref<1x64xf32, #tpu.memory_space<vmem>>, vector<1x64xf32>
    %4 = vector.broadcast %3 : vector<1x64xf32> to vector<8x64xf32>
    %5 = arith.addf %2, %4 : vector<8x64xf32>
    %cst_5 = arith.constant 5.000000e-01 : f32
    %6 = vector.broadcast %cst_5 : f32 to vector<8x64xf32>
    %7 = arith.mulf %6, %5 : vector<8x64xf32>
    %cst_6 = arith.constant 0.707106769 : f32
    %8 = vector.broadcast %cst_6 : f32 to vector<8x64xf32>
    %9 = arith.mulf %5, %8 : vector<8x64xf32>
    %10 = math.erf %9 : vector<8x64xf32>
    %cst_7 = arith.constant 1.000000e+00 : f32
    %11 = vector.broadcast %cst_7 : f32 to vector<8x64xf32>
    %12 = arith.addf %11, %10 : vector<8x64xf32>
    %13 = arith.mulf %7, %12 : vector<8x64xf32>
    %c0_8 = arith.constant 0 : index
    %c0_9 = arith.constant 0 : index
    %14 = vector.load %arg4[%c0_8, %c0_9] : memref<64x128xf32, #tpu.memory_space<vmem>>, vector<64x128xf32>
    %cst_10 = arith.constant dense<0.000000e+00> : vector<8x128xf32>
    %15 = tpu.matmul %13, %14, %cst_10 {dimension_numbers = #tpu.dot_dimension_numbers<[1], [0], [0], [1], [0, 0, 1, 1], [], []>} : vector<8x64xf32>, vector<64x128xf32>, vector<8x128xf32> -> vector<8x128xf32>
    %c0_11 = arith.constant 0 : index
    %c0_12 = arith.constant 0 : index
    %16 = vector.load %arg5[%c0_11, %c0_12] : memref<1x128xf32, #tpu.memory_space<vmem>>, vector<1x128xf32>
    %17 = vector.broadcast %16 : vector<1x128xf32> to vector<8x128xf32>
    %18 = arith.addf %15, %17 : vector<8x128xf32>
    %c0_13 = arith.constant 0 : index
    %c0_14 = arith.constant 0 : index
    %19 = vector.load %arg6[%c0_13, %c0_14] : memref<8x128xf32, #tpu.memory_space<vmem>>, vector<8x128xf32>
    tpu.vector_store %arg6[%c0_13, %c0_14], %18 {strides = array<i32>} : memref<8x128xf32, #tpu.memory_space<vmem>>, vector<8x128xf32>,
    return
  }
  func.func @transform_0(%arg0: i32) -> (i32, i32) {
    %c0_i32 = arith.constant 0 : i32
    %c0_i32_0 = arith.constant 0 : i32
    return %arg0, %c0_i32 : i32, i32
  }
  func.func @transform_1(%arg0: i32) -> (i32, i32) {
    %c0_i32 = arith.constant 0 : i32
    %c0_i32_0 = arith.constant 0 : i32
    %c0_i32_1 = arith.constant 0 : i32
    return %c0_i32, %c0_i32_0 : i32, i32
  }
  func.func @transform_2(%arg0: i32) -> (i32, i32) {
    %c0_i32 = arith.constant 0 : i32
    %c0_i32_0 = arith.constant 0 : i32
    %c0_i32_1 = arith.constant 0 : i32
    return %c0_i32, %c0_i32_0 : i32, i32
  }
  func.func @transform_3(%arg0: i32) -> (i32, i32) {
    %c0_i32 = arith.constant 0 : i32
    %c0_i32_0 = arith.constant 0 : i32
    %c0_i32_1 = arith.constant 0 : i32
    return %c0_i32, %c0_i32_0 : i32, i32
  }
  func.func @transform_4(%arg0: i32) -> (i32, i32) {
    %c0_i32 = arith.constant 0 : i32
    %c0_i32_0 = arith.constant 0 : i32
    %c0_i32_1 = arith.constant 0 : i32
    return %c0_i32, %c0_i32_0 : i32, i32
  }
  func.func @transform_5(%arg0: i32) -> (i32, i32) {
    %c0_i32 = arith.constant 0 : i32
    %c0_i32_0 = arith.constant 0 : i32
    return %arg0, %c0_i32 : i32, i32
  }
}

</mosaic_0001>

<bundles_post_ra>
// kernel: tpu_custom_call.1
= control target key start
LH: loop header
LB: loop body
LE: loop exit
PB: predicated region body
PF: predicated region fallthrough
CT: control target
= control target key end

     0   :  { %10 = vsyncpa [#allocation3], 0  ;;  %s1059_s0 = inlined_call_operand.hbm [shape: f32[16,32], index: 0, kind: input, shape index: {}]   ;;  %s1060_s1 = inlined_call_operand.hbm [shape: f32[32,64], index: 1, kind: input, shape index: {}]   ;;  %s1061_s2 = inlined_call_operand.vmem [shape: f32[1,64], index: 2, kind: input, shape index: {}]   ;;  %s1062_s3 = inlined_call_operand.hbm [shape: f32[64,128], index: 3, kind: input, shape index: {}]   ;;  %s1063_s4 = inlined_call_operand.vmem [shape: f32[1,128], index: 4, kind: input, shape index: {}]   ;;  %s1064_s5 = inlined_call_operand.hbm [shape: f32[16,128], index: 5, kind: output, shape index: {}]  }
   0x1   :  { %12 = vsyncpa [#allocation3 + $0x1], 0 }
   0x2   :  { %13 = vsyncpa [#allocation6], 0 }
   0x3   :  { %14 = vsyncpa [#allocation4], 0 }
   0x4   :  { %16 = vsyncpa [#allocation4 + $0x1], 0  ;;  %s878_s18 = smov 0   ;;  %s880_s19 = smov 0  }
   0x5   :  { %s882_s20 = smov 0   ;;  %s884_s21 = smov 0  }
   0x6 LB: > { %s899_s22 = sadd.s32 4294967295, %s838_s21   ;;  %s553_s23 = sadd.s32 4294967294, %s838_s21   ;;  %s838_s21 = sphi %s884_s21, %s1086_s21   ;;  %s834_s20 = sphi %s882_s20, %s1085_s20   ;;  %s830_s19 = sphi %s880_s19, %s1084_s19   ;;  %s826_s18 = sphi %s878_s18, %s1083_s18  }
   0x7   : > { %p42_p0 = scmp.ne.s32.totalorder %s830_s19, %s826_s18  ;;  %p1065_p1 = scmp.eq.s32.totalorder %s899_s22, 0 }
   0x8   : > { %p156_p3 = scmp.eq.s32.totalorder %s553_s23, 1  ;;  %p554_p5 = scmp.ge.s32.totalorder %s838_s21, 1 }
   0x9   : > { %p908_p4 = por %p1065_p1, %p42_p0  ;;  %p163_p7 = scmp.lt.s32.totalorder %s838_s21, 3 }
   0xa   : > { %p913_p6 = por %p156_p3, %p42_p0  ;;  %s840_s27 = smov [#allocation5]  }
   0xb   : > { %s1069_s24 = scalar_select %p908_p4, 1, 0 }
   0xc   : > { %s1070_s25 = scalar_select %p913_p6, 1, 0 }
   0xd   : > { %p918_p8 = pnand %p554_p5, %p163_p7  ;;  %s175_s28 = sshll.u32 %s840_s27, 4  ;;  %s176_s28 = int_to_ptr.vmem [resolvable:$true] %s175_s28 }
   0xe   : > { %s841_s30 = smov [#allocation7]   ;;  %s701_s7 = scalar_lea.vmem %s176_s28, 512 }
   0xf   : > { %s1071_s26 = scalar_select %p918_p8, 1, 0 }
  0x10   : > { %p629_p9 = pneg %p918_p8  ;;  %s191_s6 = sshll.u32 %s841_s30, 4  ;;  %s192_s6 = int_to_ptr.vmem [resolvable:$true] %s191_s6 }
  0x11   : > { %p702_p13 = scmp.ne.s32.totalorder %s176_s28, %s701_s7  ;;  %p709_p5 = scmp.lt.s32.totalorder %s176_s28, %s176_s28 }
  0x12   : > { %p927_p11 = pnand %p629_p9, %p1065_p1  ;;  %p710_p7 = scmp.lt.s32.totalorder %s701_s7, %s701_s7 }
  0x14   : > { %p692_p12 = pneg %p927_p11  ;;  %p711_p10 = por %p710_p7, %p709_p5 }
  0x16   : > { %p704_p0 = pnand %p702_p13, %p692_p12 }
  0x18   : > { %p705_p3 = pneg %p704_p0 }
  0x1a   : > { %p712_p9 = pnand %p711_p10, %p705_p3 }
  0x1c   : > { %715 = shalt.err (!%p712_p9)
}
  0x1d   : > { %s842_s8 = smov 128   ;;  %s843_s9 = smov 8  }
  0x1e   : > { %632 = dma.hbm_to_vmem [thread:$0]  (!%p927_p11), %s1060_s1, 512, %s176_s28, [#allocation6], %s842_s8, %s842_s8, %s843_s9  }
  0x1f   : > { %s727_s12 = scalar_lea.vmem %s192_s6, 1024  ;;  %p735_p2 = scmp.lt.s32.totalorder %s192_s6, %s192_s6 }
  0x20   : > { %p728_p1 = scmp.ne.s32.totalorder %s192_s6, %s727_s12  ;;  %p736_p6 = scmp.lt.s32.totalorder %s727_s12, %s727_s12 }
  0x22   : > { %p730_p13 = pnand %p728_p1, %p692_p12  ;;  %p737_p5 = por %p736_p6, %p735_p2 }
  0x24   : > { %p731_p0 = pneg %p730_p13 }
  0x26   : > { %p738_p10 = pnand %p737_p5, %p731_p0 }
  0x28   : > { %741 = shalt.err (!%p738_p10)
}
  0x29   : > { %635 = dma.hbm_to_vmem [thread:$0]  (!%p927_p11), %s1062_s3, 1024, %s192_s6, [#allocation6], %s842_s8, %s842_s8, %s843_s9  }
  0x2a   : > { %s950_s15 = sadd.s32 1, %s838_s21   ;;  %s29_s16 = sadd.s32 1, %s834_s20 }
  0x2b   : > { %s26_s17 = ssub.s32 %s838_s21, %s950_s15  ;;  %p36_p1 = scmp.ne.s32.totalorder %s834_s20, %s830_s19 }
  0x2c   : > { %p27_p2 = scmp.eq.s32.totalorder %s26_s17, 0  ;;  %p37_p6 = scmp.eq.s32.totalorder %s838_s21, 0 }
  0x2d   : > { %p1073_p12 = scmp.eq.s32.totalorder %s899_s22, 1  ;;  %p646_p7 = scmp.lt.s32.totalorder %s838_s21, 2 }
  0x2e   : > { %s966_s27 = scalar_select %p27_p2, %s834_s20, %s29_s16  }
  0x2f   : > { %p960_p3 = por %p1073_p12, %p36_p1  ;;  %p38_p9 = por %p37_p6, %p36_p1 }
  0x30   : > { %s208_s28 = sand.u32 1, %s834_s20   ;;  %s559_s30 = sshll.u32 %s838_s21, 7 }
  0x31   : > { %s1074_s23 = scalar_select %p960_p3, 1, 0 }
  0x32   : > { %s558_s29 = sshll.u32 %s208_s28, 3  ;;  %s973_s8 = scalar_lea.hbm %s1059_s0, %s559_s30 }
  0x33   : > { %s212_s9 = scalar_lea.vmem [#allocation2], %s558_s29  ;;  %p975_p11 = pnand %p646_p7, %p38_p9 }
  0x34   : > { %s219_s10 = sshll.u32 %s212_s9, 4  ;;  %s209_s12 = scalar_lea.sflag [#allocation3], %s208_s28  ;;  %s220_s10 = int_to_ptr.vmem [resolvable:$true] %s219_s10 }
  0x35   : > { %s742_s13 = scalar_lea.hbm %s973_s8, 128  ;;  %p744_p0 = pneg %p975_p11 }
  0x36   : > { %p743_p13 = scmp.ne.s32.totalorder %s973_s8, %s742_s13  ;;  %s747_s17 = scalar_lea.hbm %s1059_s0, 256 }
  0x37   : > { %p748_p1 = scmp.lt.s32.totalorder %s973_s8, %s1059_s0  ;;  %p749_p2 = scmp.lt.s32.totalorder %s747_s17, %s742_s13 }
  0x38   : > { %p745_p5 = pnand %p744_p0, %p743_p13 }
  0x39   : > { %p750_p6 = por %p749_p2, %p748_p1 }
  0x3a   : > { %p746_p10 = pneg %p745_p5 }
  0x3c   : > { %p751_p12 = pnand %p750_p6, %p746_p10 }
  0x3e   : > { %754 = shalt.err (!%p751_p12)
}
  0x3f   : > { %s755_s6 = scalar_lea.vmem %s220_s10, 128  ;;  %s844_s28 = smov [#allocation2]  }
  0x40   : > { %p756_p7 = scmp.ne.s32.totalorder %s220_s10, %s755_s6  ;;  %s760_s7 = sshll.u32 %s844_s28, 4  ;;  %s761_s7 = int_to_ptr.vmem [resolvable:$false] %s760_s7 }
  0x41   : > { %s762_s9 = scalar_lea.vmem %s761_s7, 256  ;;  %p763_p13 = scmp.lt.s32.totalorder %s220_s10, %s761_s7 }
  0x42   : > { %p758_p9 = pnand %p756_p7, %p744_p0  ;;  %p764_p5 = scmp.lt.s32.totalorder %s762_s9, %s755_s6 }
  0x44   : > { %p759_p3 = pneg %p758_p9  ;;  %p765_p4 = por %p764_p5, %p763_p13 }
  0x46   : > { %p766_p8 = pnand %p765_p4, %p759_p3 }
  0x48   : > { %769 = shalt.err (!%p766_p8)
}
  0x49   : > { %639 = dma.hbm_to_vmem [thread:$0]  (!%p975_p11), %s973_s8, 128, %s220_s10, %s209_s12  }
  0x4a   : > { %p1076_p10 = scmp.ne.s32.totalorder %s1071_s26, 0 }
  0x4b   : > { %s996_s13 = sand.u32 (!%p1076_p10), 1, %s830_s19   ;;  %p1077_p4 = scmp.ne.s32.totalorder (!%p1076_p10), %s1069_s24, 0 }
  0x4c   : > { %228 = sbr.rel (%p1076_p10) target bundleno = 518 (0x206), region = 40  ;;  %s561_s14 = sshll.u32 (!%p1076_p10), %s996_s13, 3 }
  0x4d   : > { %s231_s16 = scalar_lea.sflag (!%p1076_p10), [#allocation3], %s996_s13  ;;  %s234_s17 = scalar_lea.vmem (!%p1076_p10), [#allocation2], %s561_s14 }
  0x51   : > { %813 = dma.done.wait (%p1077_p4), %s231_s16, 128  }
  0x52   : > { %815 = vsyncadd (%p1077_p4), %s231_s16, 4294967168  ;;  %p1078_p8 = scmp.eq.s32.totalorder %s899_s22, 0 }
  0x54   : > { %817 = dma.done.wait (%p1078_p8), [#allocation6], 1536   ;;  %p1079_p3 = pmov %p1078_p8 }
  0x55   : > { %v845_v0 = vmov 0.0   ;;  %vm846_vm0 = vmmov 0   ;;  %v273_v1 = vld [vmem:[#allocation5 + $0x18] sm:$0xff]  ;;  %v272_v2 = vld [vmem:[#allocation5 + $0x10] sm:$0xff]  ;;  %v271_v3 = vld [vmem:[#allocation5 + $0x8] sm:$0xff]  ;;  %vm281_vm1 = vcmask 261120  }
  0x56   : > { %819 = vsyncadd (%p1079_p3), [#allocation6], 4294965760  ;;  %587 = vmatprep.subr.mxu0 %v845_v0  ;;  %595 = vmatprep.mubr.msk.f32.mxu0 %vm846_vm0, %v845_v0  ;;  %v270_v4 = vld [vmem:[#allocation5] sm:$0xff]  ;;  %v269_v5 = vld [vmem:[%s234_s17] sm:$0xff]  ;;  %vm375_vm2 = vcmask 523264   ;;  %s570_s11 = sshll.u32 %s899_s22, 7 }
  0x57   : > { %598 = vmatprep.subr.mxu1 %v845_v0  ;;  %614 = vmatprep.mubr.msk.f32.mxu1 %vm846_vm0, %v845_v0  ;;  %v367_v6 = vld [vmem:[#allocation7 + $0x38] sm:$0xff]  ;;  %v366_v7 = vld [vmem:[#allocation7 + $0x30] sm:$0xff]  ;;  %v365_v8 = vld [vmem:[#allocation7 + $0x28] sm:$0xff]  ;;  %s268_s12 = scalar_lea.vmem [#allocation8], %s561_s14  ;;  %s1022_s28 = scalar_lea.hbm %s1064_s5, %s570_s11 }
  0x58   : > { %588 = vmatpush3.msra.mxu0 %v273_v1  ;;  %599 = vmatpush3.msra.mxu1 %v367_v6  ;;  %v364_v9 = vld [vmem:[#allocation7 + $0x20] sm:$0xff]  ;;  %v363_v10 = vld [vmem:[#allocation7 + $0x18] sm:$0xff]  ;;  %v362_v11 = vld [vmem:[#allocation7 + $0x10] sm:$0xff]  ;;  %s464_s30 = sshll.u32 %s268_s12, 4  ;;  %s451_s7 = scalar_lea.sflag [#allocation4], %s996_s13  ;;  %s465_s30 = int_to_ptr.vmem [resolvable:$true] %s464_s30 }
  0x59   : > { %589 = vmatprep.subr.mxu0 %v845_v0  ;;  %600 = vmatprep.subr.mxu1 %v845_v0  ;;  %v361_v12 = vld [vmem:[#allocation7 + $0x8] sm:$0xff]  ;;  %v360_v13 = vld [vmem:[#allocation7] sm:$0xff]  ;;  %v565_v14 = vld [vmem:[%s1061_s2] ss:$0 sm:$0xff]  ;;  %s770_s9 = scalar_lea.vmem %s465_s30, 128  ;;  %p1080_p0 = scmp.ne.s32.totalorder %s1074_s23, 0 }
  0x5a   : > { %590 = vmatpush3.msra.mxu0 %v272_v2  ;;  %601 = vmatpush3.msra.mxu1 %v366_v7  ;;  %v567_v23 = vld [vmem:[%s1063_s4] ss:$0 sm:$0xff]  ;;  %p771_p11 = scmp.ne.s32.totalorder %s465_s30, %s770_s9  ;;  %s847_s22 = smov [#allocation8]  }
  0x5b   : > { %591 = vmatprep.subr.mxu0 %v845_v0  ;;  %602 = vmatprep.subr.mxu1 %v845_v0  ;;  %s774_s16 = sshll.u32 %s847_s22, 4  ;;  %s775_s16 = int_to_ptr.vmem [resolvable:$false] %s774_s16 }
  0x5c   : > { %592 = vmatpush3.msra.mxu0 %v271_v3  ;;  %603 = vmatpush3.msra.mxu1 %v365_v8  ;;  %p772_p1 = pnand %p771_p11, %p1080_p0  ;;  %s776_s14 = scalar_lea.vmem %s775_s16, 256 }
  0x5d   : > { %593 = vmatprep.subr.mxu0 %v845_v0  ;;  %604 = vmatprep.subr.mxu1 %v845_v0  ;;  %p777_p6 = scmp.lt.s32.totalorder %s465_s30, %s775_s16  ;;  %p778_p12 = scmp.lt.s32.totalorder %s776_s14, %s770_s9 }
  0x5e   : > { %594 = vmatpush3.msra.mxu0 %v270_v4  ;;  %605 = vmatpush3.msra.mxu1 %v364_v9  ;;  %p773_p2 = pneg %p772_p1 }
  0x5f   : > { %596 = vmatmul.mubr.msk.f32.vlgmr.msra.gmra.mxu0 %vm281_vm1, %v269_v5  ;;  %606 = vmatprep.subr.mxu1 %v845_v0  ;;  %p779_p7 = por %p778_p12, %p777_p6 }
  0x60   : > { %607 = vmatpush3.msra.mxu1 %v363_v10 }
  0x61   : > { %608 = vmatprep.subr.mxu1 %v845_v0  ;;  %p780_p9 = pnand %p779_p7, %p773_p2 }
  0x62   : > { %609 = vmatpush3.msra.mxu1 %v362_v11 }
  0x63   : > { %610 = vmatprep.subr.mxu1 %v845_v0 }
  0x64   : > { %611 = vmatpush3.msra.mxu1 %v361_v12 }
  0x65   : > { %612 = vmatprep.subr.mxu1 %v845_v0 }
  0x66   : > { %613 = vmatpush3.msra.mxu1 %v360_v13 }
 0x11f   : > { %v351_v15 = vpop.f32.mrf.mxu0 }
 0x120   : > { %v352_v16 = vadd.f32 %v565_v14, %v351_v15 }
 0x121   : > { %v597_v17 = vpop.f32.mrf.mxu0 }
 0x122   : > { %v356_v18 = vmul.f32 0.70710677, %v352_v16  ;;  %v355_v20 = vmul.f32 0.5, %v352_v16 }
 0x124   : > { %688 = verf.f32 %v356_v18 }
 0x131   : > { %v689_v19 = vpop.eup %688 }
 0x132   : > { %v358_v21 = vadd.f32 1.0, %v689_v19 }
 0x134   : > { %v359_v22 = vmul.f32 %v358_v21, %v355_v20 }
 0x136   : > { %615 = vmatmul.mubr.msk.f32.vlgmr.msra.gmra.mxu1 %vm375_vm2, %v359_v22 }
 0x1f6   : > { %v445_v24 = vpop.f32.mrf.mxu1 }
 0x1f7   : > { %v446_v25 = vadd.f32 %v567_v23, %v445_v24 }
 0x1f8   : > { %v616_v26 = vpop.f32.mrf.mxu1 }
 0x1f9   : > { %449 = vst [vmem:[%s268_s12] sm:$0xff] %v446_v25 }
 0x1fa   : > { %783 = shalt.err (!%p780_p9)
}
 0x1fb   : > { %s784_s17 = scalar_lea.hbm %s1022_s28, 128  ;;  %s788_s26 = scalar_lea.hbm %s1064_s5, 256 }
 0x1fc   : > { %p785_p13 = scmp.ne.s32.totalorder %s1022_s28, %s784_s17  ;;  %p789_p4 = scmp.lt.s32.totalorder %s1022_s28, %s1064_s5 }
 0x1fd   : > { %p790_p8 = scmp.lt.s32.totalorder %s788_s26, %s784_s17 }
 0x1fe   : > { %p786_p5 = pnand %p785_p13, %p1080_p0 }
 0x1ff   : > { %p791_p3 = por %p790_p8, %p789_p4 }
 0x200   : > { %p787_p10 = pneg %p786_p5 }
 0x202   : > { %p792_p11 = pnand %p791_p3, %p787_p10 }
 0x204   : > { %795 = shalt.err (!%p792_p11)
}
 0x205   : > { %627 = dma.vmem_to_hbm [thread:$0]  (%p1080_p0), %s465_s30, 128, %s1022_s28, %s451_s7  }
 0x206 PF: > { %s476_s11 = sand.u32 1, %s826_s18   ;;  %p1081_p1 = scmp.ne.s32.totalorder %s1070_s25, 0 }
 0x207   : > { %p1082_p2 = scmp.ge.s32.totalorder %s838_s21, 2  ;;  %s477_s12 = scalar_lea.sflag [#allocation4], %s476_s11 }
 0x209   : > { %p641_p6 = pnand %p1082_p2, %p1081_p1 }
 0x20b   : > { %p642_p12 = pneg %p641_p6 }
 0x20d   : > { %821 = dma.done.wait (%p642_p12), %s477_s12, 128  }
 0x20e   : > { %823 = vsyncadd (%p642_p12), %s477_s12, 4294967168  ;;  %p19_p7 = scmp.ge.s32.totalorder %s950_s15, 4   ;;  %s1083_s18 = smov %s830_s19 }
 0x20f   : > { %s1084_s19 = smov %s834_s20  ;;  %s1085_s20 = smov %s966_s27 }
 0x210   : > { %s1086_s21 = smov %s950_s15  ;;  %21 = sbr.rel (!%p19_p7) target bundleno = 6 (0x6), region = 93 }
 0x215   :  { %482 = vsyncpa [#allocation3], 1 }
 0x216   :  { %484 = vsyncpa [#allocation3 + $0x1], 1 }
 0x217   :  { %485 = vsyncpa [#allocation6], 1 }
 0x218   :  { %486 = vsyncpa [#allocation4], 1 }
 0x219   :  { %488 = vsyncpa [#allocation4 + $0x1], 1 }

</bundles_post_ra>
